<compile_context>
chip_gen: v5e
topology: v5e:2x2
jax: 0.10.0
libtpu: 0.0.40
codegen_flags: <defaults>
</compile_context>

<pallas_src>
import functools

import numpy as np
import jax
import jax.numpy as jnp
from jax.experimental import pallas as pl
from jax.experimental.pallas import tpu as pltpu

# ---------------- problem sizes (small, consistent with the module) ----------------
NM_G = 2                       # molecules per grid step ("group")
G_GROUPS = 4                   # grid size -> 8 molecules per pallas_call
ATOMS_PER_MOL = 8              # ring molecules
NA_G = NM_G * ATOMS_PER_MOL    # 16 atoms / group
NB_G = NA_G * 2                # 32 directed bonds / group
FA = 16                        # atom feature dim   (chemprop default would be 133)
FB = 32                        # bond feature dim   (chemprop default would be 147)
H = 32                         # hidden_size        (module default 300; small here)
DEPTH = 3                      # message-passing depth
NUM_TASKS = 1                  # output size

LANES = 32                     # lane width of the per-group data pack (= H = NB_G = FB)
ATOM_PAD = 32                  # atom rows padded to 32 (aligned slices + padded readout dot)
MOL_PAD = 16                   # per-group molecule rows padded to 16 (unmasked output store)
OUT_PAD = 128                  # lane-dense output width; wrapper takes column 0

# DATA pack row offsets (per group); all multiples of 16 (bf16 sublane packing)
_FA_OFF, _FB_OFF, _M_OFF, _A2B_OFF, _SC_OFF = 0, 32, 64, 96, 128
D_ROWS = 144

# WB pack row offsets; all multiples of 16
_WI, _WH, _WOA, _WOM, _WF1, _WF2, _BIAS = 0, 32, 64, 96, 128, 160, 192
W_ROWS = 208


# ---------------- Pallas kernel: full MPN encoder + FFN for one molecule group ------
def mpnn_kernel(d_ref, w_ref, out_ref):
    f32 = jnp.float32
    bf16 = jnp.bfloat16
    dot = functools.partial(jnp.dot, preferred_element_type=f32)

    # per-group data pack (bf16, lane width 32) -- one DMA
    f_atoms = d_ref[_FA_OFF:_FA_OFF + ATOM_PAD, :]    # (32,32): rows>=16 zero; lane FA = 1 (bias feat)
    f_bonds = d_ref[_FB_OFF:_FB_OFF + NB_G, :]        # (32,32)
    M       = d_ref[_M_OFF:_M_OFF + NB_G, :]          # (32,32) = B2A@A2B - REV (pre-folded, exact)
    A2B     = d_ref[_A2B_OFF:_A2B_OFF + ATOM_PAD, :]  # (32,32): rows>=16 zero
    SCOPE   = d_ref[_SC_OFF:_SC_OFF + MOL_PAD, :]     # (16,32): mean-readout weights, rows>=NM_G zero

    # shared weight/bias pack (bf16) -- constant block index, fetched once for the grid
    W_i  = w_ref[_WI:_WI + FB, 0:H]                   # (FB,H)
    W_h  = w_ref[_WH:_WH + H, 0:H]                    # (H,H)
    W_oa = w_ref[_WOA:_WOA + ATOM_PAD, 0:H]           # (32,H): rows 0:FA = W_o_atom, row FA = b_o
    W_om = w_ref[_WOM:_WOM + H, 0:H]                  # (H,H)
    W_f1 = w_ref[_WF1:_WF1 + H, 0:H]                  # (H,H)
    W_f2 = w_ref[_WF2:_WF2 + H, :]                    # (H,128): W_ffn2 replicated across lanes
    b_f1 = w_ref[_BIAS:_BIAS + 1, 0:H].astype(f32)    # (1,H)
    b_f2 = w_ref[_BIAS + 1:_BIAS + 2, :].astype(f32)  # (1,128): b_ffn2 replicated across lanes

    # --- MPN encoder (bond messages; W_i / W_h have bias=False) ---
    inp = dot(f_bonds, W_i)                           # (NB,H) f32 accumulation
    msg = jnp.maximum(inp, 0.0)                       # ReLU (f32 VPU)

    # depth-1 iterations (depth=3 -> 2), unrolled; a2b-sum / b2revb / b2a chain pre-folded into M
    for _ in range(DEPTH - 1):
        agg = dot(M, msg.astype(bf16))                              # (NB,H)
        msg = jnp.maximum(inp + dot(agg.astype(bf16), W_h), 0.0)    # dropout p=0 -> identity

    # final atom states: relu(f_atoms @ W_o_atom + (A2B@msg) @ W_o_msg + b_o)
    # (b_o enters through the constant-1 feature at lane FA; padded atom rows stay 0)
    a_msg = dot(A2B, msg.astype(bf16))                              # (ATOM_PAD,H)
    atom_h = jnp.maximum(dot(f_atoms, W_oa) + dot(a_msg.astype(bf16), W_om), 0.0)

    # readout: per-molecule mean (aggregation='mean') as a padded, tile-aligned dot
    mol = dot(SCOPE, atom_h.astype(bf16))                           # (MOL_PAD,H)

    # --- FFN: Dropout(0) -> Linear(H,H) -> ReLU -> Dropout(0) -> Linear(H,1) on the MXU ---
    h1 = jnp.maximum(dot(mol.astype(bf16), W_f1) + b_f1, 0.0)       # (MOL_PAD,H)
    out_ref[...] = dot(h1.astype(bf16), W_f2) + b_f2                # (MOL_PAD,OUT_PAD) lane-dense
    # TODO(synk): nonzero dropout / MVE softplus / classification sigmoid branches are
    # disabled by the module defaults used here.


def molecule_model_forward(data, wb):
    out = pl.pallas_call(
        mpnn_kernel,
        out_shape=jax.ShapeDtypeStruct((G_GROUPS, MOL_PAD, OUT_PAD), jnp.float32),
        grid=(G_GROUPS,),
        in_specs=[
            pl.BlockSpec((None, D_ROWS, LANES), lambda g: (g, 0, 0)),   # per-group pack
            pl.BlockSpec((W_ROWS, OUT_PAD), lambda g: (0, 0)),          # shared weights
        ],
        out_specs=pl.BlockSpec((None, MOL_PAD, OUT_PAD), lambda g: (g, 0, 0)),
        compiler_params=pltpu.CompilerParams(dimension_semantics=("parallel",)),
    )(data, wb)
    # keep the NM_G real molecule rows per group and output column 0 (NUM_TASKS == 1)
    return out[:, :NM_G, :NUM_TASKS].reshape(G_GROUPS * NM_G, NUM_TASKS)


# ---------------- deterministic synthetic graph + parameters ----------------
def build_group_graph():
    """One group = NM_G ring molecules of 8 atoms; 16 directed bonds per molecule."""
    b2a, b2t, b2revb = [], [], []
    for m in range(NM_G):
        base_a = m * ATOMS_PER_MOL
        base_b = m * ATOMS_PER_MOL * 2
        for e in range(ATOMS_PER_MOL):
            u = base_a + e
            v = base_a + (e + 1) % ATOMS_PER_MOL
            b2a += [u, v]              # bond 2e: u -> v ; bond 2e+1: v -> u
            b2t += [v, u]
            b2revb += [base_b + 2 * e + 1, base_b + 2 * e]

    A2B = np.zeros((NA_G, NB_G), np.float32)      # incoming-bond indicator
    for b, t in enumerate(b2t):
        A2B[t, b] = 1.0
    REV = np.zeros((NB_G, NB_G), np.float32)      # REV @ msg == msg[b2revb]
    for b, rb in enumerate(b2revb):
        REV[b, rb] = 1.0
    B2A = np.zeros((NB_G, NA_G), np.float32)      # B2A @ a_msg == a_msg[b2a]
    for b, a in enumerate(b2a):
        B2A[b, a] = 1.0
    SCOPE = np.zeros((NM_G, NA_G), np.float32)    # mean aggregation
    for m in range(NM_G):
        SCOPE[m, m * ATOMS_PER_MOL:(m + 1) * ATOMS_PER_MOL] = 1.0 / ATOMS_PER_MOL
    return A2B, REV, B2A, SCOPE


def init_params(key):
    ks = jax.random.split(key, 9)
    s = 0.1
    return {
        "W_i":      s * jax.random.normal(ks[0], (FB, H), jnp.float32),
        "W_h":      s * jax.random.normal(ks[1], (H, H), jnp.float32),
        "W_o_atom": s * jax.random.normal(ks[2], (FA, H), jnp.float32),
        "W_o_msg":  s * jax.random.normal(ks[3], (H, H), jnp.float32),
        "b_o":      s * jax.random.normal(ks[4], (1, H), jnp.float32),
        "W_ffn1":   s * jax.random.normal(ks[5], (H, H), jnp.float32),
        "b_ffn1":   s * jax.random.normal(ks[6], (1, H), jnp.float32),
        "W_ffn2":   s * jax.random.normal(ks[7], (H, NUM_TASKS), jnp.float32),
        "b_ffn2":   s * jax.random.normal(ks[8], (1, NUM_TASKS), jnp.float32),
    }


def pack_inputs(f_atoms, f_bonds, A2B, REV, B2A, SCOPE, p):
    """Host-side pre-folding + packing -> 2 packed bf16 arrays (per-group data, weights)."""
    fa = np.asarray(f_atoms)
    fb = np.asarray(f_bonds)
    pn = {k: np.asarray(v) for k, v in p.items()}

    # Exact algebraic fold of the per-iteration graph-index chain.
    M = B2A @ A2B - REV                                             # (NB_G, NB_G), entries in {0,1}

    data = np.zeros((G_GROUPS, D_ROWS, LANES), np.float32)
    for g in range(G_GROUPS):
        data[g, _FA_OFF:_FA_OFF + NA_G, :FA] = fa[g]
        data[g, _FA_OFF:_FA_OFF + NA_G, FA] = 1.0                   # constant-1 feature folds b_o
        data[g, _FB_OFF:_FB_OFF + NB_G, :FB] = fb[g]
        data[g, _M_OFF:_M_OFF + NB_G, :NB_G] = M
        data[g, _A2B_OFF:_A2B_OFF + NA_G, :NB_G] = A2B
        data[g, _SC_OFF:_SC_OFF + NM_G, :NA_G] = SCOPE

    wb = np.zeros((W_ROWS, OUT_PAD), np.float32)
    wb[_WI:_WI + FB, :H] = pn["W_i"]
    wb[_WH:_WH + H, :H] = pn["W_h"]
    wb[_WOA:_WOA + FA, :H] = pn["W_o_atom"]
    wb[_WOA + FA, :H] = pn["b_o"][0]                                # picked up by constant-1 feature
    wb[_WOM:_WOM + H, :H] = pn["W_o_msg"]
    wb[_WF1:_WF1 + H, :H] = pn["W_ffn1"]
    wb[_WF2:_WF2 + H, :] = np.tile(pn["W_ffn2"], (1, OUT_PAD))      # lane-replicated -> lane-dense out
    wb[_BIAS, :H] = pn["b_ffn1"][0]
    wb[_BIAS + 1, :] = pn["b_ffn2"][0, 0]

    return jnp.asarray(data, jnp.bfloat16), jnp.asarray(wb, jnp.bfloat16)


def reference_forward(f_atoms, f_bonds, A2B, REV, B2A, SCOPE, p):
    """Pure-JAX f32 reference in the ORIGINAL (un-folded, un-fused) form."""
    A2B = jnp.asarray(A2B); REV = jnp.asarray(REV)
    B2A = jnp.asarray(B2A); SCOPE = jnp.asarray(SCOPE)
    outs = []
    for g in range(G_GROUPS):
        inp = f_bonds[g] @ p["W_i"]
        msg = jnp.maximum(inp, 0.0)
        for _ in range(DEPTH - 1):
            m = B2A @ (A2B @ msg) - REV @ msg
            msg = jnp.maximum(inp + m @ p["W_h"], 0.0)
        atom_h = jnp.maximum(
            f_atoms[g] @ p["W_o_atom"] + (A2B @ msg) @ p["W_o_msg"] + p["b_o"], 0.0)
        mol = SCOPE @ atom_h
        h1 = jnp.maximum(mol @ p["W_ffn1"] + p["b_ffn1"], 0.0)
        outs.append(h1 @ p["W_ffn2"] + p["b_ffn2"])
    return jnp.concatenate(outs, axis=0)                            # (G_GROUPS*NM_G, NUM_TASKS)


if __name__ == "__main__":
    key = jax.random.PRNGKey(0)
    k_fa, k_fb, k_p = jax.random.split(key, 3)

    f_atoms = jax.random.normal(k_fa, (G_GROUPS, NA_G, FA), jnp.float32)
    f_bonds = jax.random.normal(k_fb, (G_GROUPS, NB_G, FB), jnp.float32)
    A2B, REV, B2A, SCOPE = build_group_graph()
    params = init_params(k_p)
    data, wb = pack_inputs(f_atoms, f_bonds, A2B, REV, B2A, SCOPE, params)

    out = molecule_model_forward(data, wb)
    out = jax.block_until_ready(out)

    ref = reference_forward(f_atoms, f_bonds, A2B, REV, B2A, SCOPE, params)
    assert out.shape == (G_GROUPS * NM_G, NUM_TASKS)
    # bf16 MXU operands (per perf review) -> tolerance loosened vs. the f32 reference
    assert jnp.allclose(out, ref, atol=3e-2, rtol=3e-2), (out, ref)
    print("KERNEL_OK")
</pallas_src>

<mosaic_0001>
module attributes {stable_mosaic.version = 11 : i64} {
  func.func @mpnn_kernel(%arg0: i32, %arg1: memref<1x144x32xbf16, #tpu.memory_space<vmem>>, %arg2: memref<208x128xbf16, #tpu.memory_space<vmem>>, %arg3: memref<1x16x128xf32, #tpu.memory_space<vmem>>) attributes {dimension_semantics = [#tpu.dimension_semantics<parallel>], iteration_bounds = array<i64: 4>, scalar_prefetch = 0 : i64, scratch_operands = 0 : i64, tpu.core_type = #tpu.core_type<tc>, window_params = [{transform_indices = @transform_0, window_bounds = array<i64: 1, 144, 32>}, {pipeline_mode = #tpu.pipeline_mode<synchronous>, transform_indices = @transform_1, window_bounds = array<i64: 208, 128>}, {transform_indices = @transform_2, window_bounds = array<i64: 1, 16, 128>}]} {
    %c0 = arith.constant 0 : index
    %c0_0 = arith.constant 0 : index
    %c0_1 = arith.constant 0 : index
    %0 = vector.load %arg1[%c0, %c0_0, %c0_1] : memref<1x144x32xbf16, #tpu.memory_space<vmem>>, vector<1x32x32xbf16>
    %1 = vector.shape_cast %0 : vector<1x32x32xbf16> to vector<32x32xbf16>
    %c0_2 = arith.constant 0 : index
    %c32 = arith.constant 32 : index
    %c0_3 = arith.constant 0 : index
    %2 = vector.load %arg1[%c0_2, %c32, %c0_3] : memref<1x144x32xbf16, #tpu.memory_space<vmem>>, vector<1x32x32xbf16>
    %3 = vector.shape_cast %2 : vector<1x32x32xbf16> to vector<32x32xbf16>
    %c0_4 = arith.constant 0 : index
    %c64 = arith.constant 64 : index
    %c0_5 = arith.constant 0 : index
    %4 = vector.load %arg1[%c0_4, %c64, %c0_5] : memref<1x144x32xbf16, #tpu.memory_space<vmem>>, vector<1x32x32xbf16>
    %5 = vector.shape_cast %4 : vector<1x32x32xbf16> to vector<32x32xbf16>
    %c0_6 = arith.constant 0 : index
    %c96 = arith.constant 96 : index
    %c0_7 = arith.constant 0 : index
    %6 = vector.load %arg1[%c0_6, %c96, %c0_7] : memref<1x144x32xbf16, #tpu.memory_space<vmem>>, vector<1x32x32xbf16>
    %7 = vector.shape_cast %6 : vector<1x32x32xbf16> to vector<32x32xbf16>
    %c0_8 = arith.constant 0 : index
    %c128 = arith.constant 128 : index
    %c0_9 = arith.constant 0 : index
    %8 = vector.load %arg1[%c0_8, %c128, %c0_9] : memref<1x144x32xbf16, #tpu.memory_space<vmem>>, vector<1x16x32xbf16>
    %9 = vector.shape_cast %8 : vector<1x16x32xbf16> to vector<16x32xbf16>
    %c0_10 = arith.constant 0 : index
    %c0_11 = arith.constant 0 : index
    %10 = vector.load %arg2[%c0_10, %c0_11] : memref<208x128xbf16, #tpu.memory_space<vmem>>, vector<32x32xbf16>
    %c32_12 = arith.constant 32 : index
    %c0_13 = arith.constant 0 : index
    %11 = vector.load %arg2[%c32_12, %c0_13] : memref<208x128xbf16, #tpu.memory_space<vmem>>, vector<32x32xbf16>
    %c64_14 = arith.constant 64 : index
    %c0_15 = arith.constant 0 : index
    %12 = vector.load %arg2[%c64_14, %c0_15] : memref<208x128xbf16, #tpu.memory_space<vmem>>, vector<32x32xbf16>
    %c96_16 = arith.constant 96 : index
    %c0_17 = arith.constant 0 : index
    %13 = vector.load %arg2[%c96_16, %c0_17] : memref<208x128xbf16, #tpu.memory_space<vmem>>, vector<32x32xbf16>
    %c128_18 = arith.constant 128 : index
    %c0_19 = arith.constant 0 : index
    %14 = vector.load %arg2[%c128_18, %c0_19] : memref<208x128xbf16, #tpu.memory_space<vmem>>, vector<32x32xbf16>
    %c160 = arith.constant 160 : index
    %c0_20 = arith.constant 0 : index
    %15 = vector.load %arg2[%c160, %c0_20] : memref<208x128xbf16, #tpu.memory_space<vmem>>, vector<32x128xbf16>
    %c192 = arith.constant 192 : index
    %c0_21 = arith.constant 0 : index
    %16 = vector.load %arg2[%c192, %c0_21] : memref<208x128xbf16, #tpu.memory_space<vmem>>, vector<1x32xbf16>
    %17 = arith.extf %16 : vector<1x32xbf16> to vector<1x32xf32>
    %c193 = arith.constant 193 : index
    %c0_22 = arith.constant 0 : index
    %18 = vector.load %arg2[%c193, %c0_22] : memref<208x128xbf16, #tpu.memory_space<vmem>>, vector<1x128xbf16>
    %19 = arith.extf %18 : vector<1x128xbf16> to vector<1x128xf32>
    %cst = arith.constant dense<0.000000e+00> : vector<32x32xf32>
    %20 = tpu.matmul %3, %10, %cst {dimension_numbers = #tpu.dot_dimension_numbers<[1], [0], [0], [1], [0, 0, 1, 1], [], []>} : vector<32x32xbf16>, vector<32x32xbf16>, vector<32x32xf32> -> vector<32x32xf32>
    %cst_23 = arith.constant 0.000000e+00 : f32
    %21 = vector.broadcast %cst_23 : f32 to vector<32x32xf32>
    %22 = arith.maximumf %20, %21 : vector<32x32xf32>
    %23 = arith.truncf %22 : vector<32x32xf32> to vector<32x32xbf16>
    %cst_24 = arith.constant dense<0.000000e+00> : vector<32x32xf32>
    %24 = tpu.matmul %5, %23, %cst_24 {dimension_numbers = #tpu.dot_dimension_numbers<[1], [0], [0], [1], [0, 0, 1, 1], [], []>} : vector<32x32xbf16>, vector<32x32xbf16>, vector<32x32xf32> -> vector<32x32xf32>
    %25 = arith.truncf %24 : vector<32x32xf32> to vector<32x32xbf16>
    %cst_25 = arith.constant dense<0.000000e+00> : vector<32x32xf32>
    %26 = tpu.matmul %25, %11, %cst_25 {dimension_numbers = #tpu.dot_dimension_numbers<[1], [0], [0], [1], [0, 0, 1, 1], [], []>} : vector<32x32xbf16>, vector<32x32xbf16>, vector<32x32xf32> -> vector<32x32xf32>
    %27 = arith.addf %20, %26 : vector<32x32xf32>
    %cst_26 = arith.constant 0.000000e+00 : f32
    %28 = vector.broadcast %cst_26 : f32 to vector<32x32xf32>
    %29 = arith.maximumf %27, %28 : vector<32x32xf32>
    %30 = arith.truncf %29 : vector<32x32xf32> to vector<32x32xbf16>
    %cst_27 = arith.constant dense<0.000000e+00> : vector<32x32xf32>
    %31 = tpu.matmul %5, %30, %cst_27 {dimension_numbers = #tpu.dot_dimension_numbers<[1], [0], [0], [1], [0, 0, 1, 1], [], []>} : vector<32x32xbf16>, vector<32x32xbf16>, vector<32x32xf32> -> vector<32x32xf32>
    %32 = arith.truncf %31 : vector<32x32xf32> to vector<32x32xbf16>
    %cst_28 = arith.constant dense<0.000000e+00> : vector<32x32xf32>
    %33 = tpu.matmul %32, %11, %cst_28 {dimension_numbers = #tpu.dot_dimension_numbers<[1], [0], [0], [1], [0, 0, 1, 1], [], []>} : vector<32x32xbf16>, vector<32x32xbf16>, vector<32x32xf32> -> vector<32x32xf32>
    %34 = arith.addf %20, %33 : vector<32x32xf32>
    %cst_29 = arith.constant 0.000000e+00 : f32
    %35 = vector.broadcast %cst_29 : f32 to vector<32x32xf32>
    %36 = arith.maximumf %34, %35 : vector<32x32xf32>
    %37 = arith.truncf %36 : vector<32x32xf32> to vector<32x32xbf16>
    %cst_30 = arith.constant dense<0.000000e+00> : vector<32x32xf32>
    %38 = tpu.matmul %7, %37, %cst_30 {dimension_numbers = #tpu.dot_dimension_numbers<[1], [0], [0], [1], [0, 0, 1, 1], [], []>} : vector<32x32xbf16>, vector<32x32xbf16>, vector<32x32xf32> -> vector<32x32xf32>
    %cst_31 = arith.constant dense<0.000000e+00> : vector<32x32xf32>
    %39 = tpu.matmul %1, %12, %cst_31 {dimension_numbers = #tpu.dot_dimension_numbers<[1], [0], [0], [1], [0, 0, 1, 1], [], []>} : vector<32x32xbf16>, vector<32x32xbf16>, vector<32x32xf32> -> vector<32x32xf32>
    %40 = arith.truncf %38 : vector<32x32xf32> to vector<32x32xbf16>
    %cst_32 = arith.constant dense<0.000000e+00> : vector<32x32xf32>
    %41 = tpu.matmul %40, %13, %cst_32 {dimension_numbers = #tpu.dot_dimension_numbers<[1], [0], [0], [1], [0, 0, 1, 1], [], []>} : vector<32x32xbf16>, vector<32x32xbf16>, vector<32x32xf32> -> vector<32x32xf32>
    %42 = arith.addf %39, %41 : vector<32x32xf32>
    %cst_33 = arith.constant 0.000000e+00 : f32
    %43 = vector.broadcast %cst_33 : f32 to vector<32x32xf32>
    %44 = arith.maximumf %42, %43 : vector<32x32xf32>
    %45 = arith.truncf %44 : vector<32x32xf32> to vector<32x32xbf16>
    %cst_34 = arith.constant dense<0.000000e+00> : vector<16x32xf32>
    %46 = tpu.matmul %9, %45, %cst_34 {dimension_numbers = #tpu.dot_dimension_numbers<[1], [0], [0], [1], [0, 0, 1, 1], [], []>} : vector<16x32xbf16>, vector<32x32xbf16>, vector<16x32xf32> -> vector<16x32xf32>
    %47 = arith.truncf %46 : vector<16x32xf32> to vector<16x32xbf16>
    %cst_35 = arith.constant dense<0.000000e+00> : vector<16x32xf32>
    %48 = tpu.matmul %47, %14, %cst_35 {dimension_numbers = #tpu.dot_dimension_numbers<[1], [0], [0], [1], [0, 0, 1, 1], [], []>} : vector<16x32xbf16>, vector<32x32xbf16>, vector<16x32xf32> -> vector<16x32xf32>
    %49 = vector.broadcast %17 : vector<1x32xf32> to vector<16x32xf32>
    %50 = arith.addf %48, %49 : vector<16x32xf32>
    %cst_36 = arith.constant 0.000000e+00 : f32
    %51 = vector.broadcast %cst_36 : f32 to vector<16x32xf32>
    %52 = arith.maximumf %50, %51 : vector<16x32xf32>
    %53 = arith.truncf %52 : vector<16x32xf32> to vector<16x32xbf16>
    %cst_37 = arith.constant dense<0.000000e+00> : vector<16x128xf32>
    %54 = tpu.matmul %53, %15, %cst_37 {dimension_numbers = #tpu.dot_dimension_numbers<[1], [0], [0], [1], [0, 0, 1, 1], [], []>} : vector<16x32xbf16>, vector<32x128xbf16>, vector<16x128xf32> -> vector<16x128xf32>
    %55 = vector.broadcast %19 : vector<1x128xf32> to vector<16x128xf32>
    %56 = arith.addf %54, %55 : vector<16x128xf32>
    %c0_38 = arith.constant 0 : index
    %c0_39 = arith.constant 0 : index
    %c0_40 = arith.constant 0 : index
    %57 = vector.load %arg3[%c0_38, %c0_39, %c0_40] : memref<1x16x128xf32, #tpu.memory_space<vmem>>, vector<1x16x128xf32>
    %58 = vector.shape_cast %57 : vector<1x16x128xf32> to vector<16x128xf32>
    %59 = vector.shape_cast %56 : vector<16x128xf32> to vector<1x16x128xf32>
    tpu.vector_store %arg3[%c0_38, %c0_39, %c0_40], %59 {strides = array<i32>} : memref<1x16x128xf32, #tpu.memory_space<vmem>>, vector<1x16x128xf32>,
    return
  }
  func.func @transform_0(%arg0: i32) -> (i32, i32, i32) {
    %c0_i32 = arith.constant 0 : i32
    %c0_i32_0 = arith.constant 0 : i32
    %c0_i32_1 = arith.constant 0 : i32
    return %arg0, %c0_i32, %c0_i32_0 : i32, i32, i32
  }
  func.func @transform_1(%arg0: i32) -> (i32, i32) {
    %c0_i32 = arith.constant 0 : i32
    %c0_i32_0 = arith.constant 0 : i32
    %c0_i32_1 = arith.constant 0 : i32
    return %c0_i32, %c0_i32_0 : i32, i32
  }
  func.func @transform_2(%arg0: i32) -> (i32, i32, i32) {
    %c0_i32 = arith.constant 0 : i32
    %c0_i32_0 = arith.constant 0 : i32
    %c0_i32_1 = arith.constant 0 : i32
    return %arg0, %c0_i32, %c0_i32_0 : i32, i32, i32
  }
}

</mosaic_0001>

<bundles_post_ra>
// kernel: tpu_custom_call.1
= control target key start
LH: loop header
LB: loop body
LE: loop exit
PB: predicated region body
PF: predicated region fallthrough
CT: control target
= control target key end

     0   :  { %7 = vsyncpa [#allocation3], 0  ;;  %s1092_s0 = inlined_call_operand.vmem [shape: bf16[4,144,32], index: 0, kind: input, shape index: {}]   ;;  %s1093_s1 = inlined_call_operand.vmem [shape: bf16[208,128], index: 1, kind: input, shape index: {}]   ;;  %s1094_s2 = inlined_call_operand.hbm [shape: f32[4,16,128], index: 2, kind: output, shape index: {}]  }
   0x1   :  { %9 = vsyncpa [#allocation3 + $0x1], 0  ;;  %s933_s9 = smov 0   ;;  %s935_s10 = smov 0  }
   0x2   :  { %s937_s11 = smov 0   ;;  %s939_s12 = smov 0  }
   0x3 LB: > { %s954_s13 = sadd.s32 4294967295, %s914_s12   ;;  %s674_s14 = sadd.s32 4294967294, %s914_s12   ;;  %s914_s12 = sphi %s939_s12, %s1100_s12   ;;  %s910_s11 = sphi %s937_s11, %s1099_s11   ;;  %s906_s10 = sphi %s935_s10, %s1098_s10   ;;  %s902_s9 = sphi %s933_s9, %s1097_s9  }
   0x4   : > { %s958_s15 = sadd.s32 1, %s914_s12   ;;  %s69_s16 = sadd.s32 1, %s910_s11 }
   0x5   : > { %s66_s17 = ssub.s32 %s914_s12, %s958_s15  ;;  %p79_p0 = scmp.ne.s32.totalorder %s910_s11, %s906_s10 }
   0x6   : > { %p67_p1 = scmp.eq.s32.totalorder %s66_s17, 0  ;;  %p80_p2 = scmp.eq.s32.totalorder %s954_s13, 3 }
   0x7   : > { %p85_p3 = scmp.ne.s32.totalorder %s906_s10, %s902_s9  ;;  %p86_p4 = scmp.eq.s32.totalorder %s674_s14, 3 }
   0x8   : > { %s969_s18 = scalar_select %p67_p1, %s910_s11, %s69_s16  }
   0x9   : > { %p971_p5 = por %p80_p2, %p79_p0  ;;  %p975_p6 = por %p86_p4, %p85_p3 }
   0xa   : > { %p677_p7 = scmp.ge.s32.totalorder %s914_s12, 1  ;;  %p115_p8 = scmp.lt.s32.totalorder %s914_s12, 5 }
   0xc   : > { %p116_p9 = pnand %p677_p7, %p115_p8 }
   0xd   : > { %p137_p10 = scmp.lt.s32.totalorder (!%p116_p9), %s954_s13, 3  ;;  %s134_s5 = sand.u32 (!%p116_p9), 1, %s906_s10  }
   0xe   : > { %119 = sbr.rel (%p116_p9) target bundleno = 1525 (0x5f5), region = 28  ;;  %s678_s6 = sshll.u32 (!%p116_p9), %s134_s5, 4 }
   0xf   : > { %s809_s7 = sshll.u32 (!%p116_p9), %s954_s13, 4  ;;  %s136_s17 = scalar_lea.vmem (!%p116_p9), [#allocation2], %s678_s6 }
  0x10   : > { %s608_s16 = scalar_lea.hbm (!%p116_p9), %s1094_s2, %s809_s7  ;;  %s609_s21 = sshll.u32 (!%p116_p9), %s136_s17, 4  ;;  %s610_s21 = int_to_ptr.vmem [resolvable:$true] %s609_s21 }
  0x11   : > { %s611_s22 = sshll.u32 (!%p116_p9), %s608_s16, 4  ;;  %s597_s23 = scalar_lea.sflag (!%p116_p9), [#allocation3], %s134_s5  ;;  %s612_s22 = int_to_ptr.hbm [resolvable:$true] %s611_s22 }
  0x12   : > { %s866_s24 = sshra.s32 (!%p116_p9), %s612_s22, 4  ;;  %s872_s27 = scalar_lea.hbm (!%p116_p9), %s1094_s2, 64  ;;  %s867_s24 = int_to_ptr.hbm [resolvable:$true] %s866_s24 }
  0x13   : > { %v798_v0 = vld [vmem:[%s1093_s1 + $0x8] sm:$0xff]  ;;  %v797_v1 = vld [vmem:[%s1093_s1] sm:$0xff]  ;;  %s138_s25 = scalar_select %p137_p10, %s954_s13, 3  ;;  %vm209_vm0 = vcmask 261120   ;;  %v800_v16 = vld [vmem:[%s1093_s1 + $0x18] sm:$0xff] }
  0x14   : > { %222 = vmatpush.bf16.msra.mxu0 %v798_v0  ;;  %302 = vmatpush.bf16.msra.mxu2 %v800_v16  ;;  %v799_v17 = vld [vmem:[%s1093_s1 + $0x10] sm:$0xff]  ;;  %v802_v47 = vld [vmem:[%s1093_s1 + $0x28] sm:$0xff]  ;;  %v801_v61 = vld [vmem:[%s1093_s1 + $0x20] sm:$0xff]  ;;  %s868_s13 = scalar_lea.hbm %s867_s24, 16  ;;  %p873_p0 = scmp.lt.s32.totalorder %s867_s24, %s1094_s2 }
  0x15   : > { %s810_s26 = smul.u32 72, %s138_s25  ;;  %v804_v63 = vld [vmem:[%s1093_s1 + $0x38] sm:$0xff]  ;;  %v803_v0 = vld [vmem:[%s1093_s1 + $0x30] sm:$0xff]  ;;  %p869_p11 = scmp.ne.s32.totalorder %s867_s24, %s868_s13 }
  0x16   : > { %p874_p1 = scmp.lt.s32.totalorder %s872_s27, %s868_s13 }
  0x17   : > { %s992_s29 = scalar_lea.vmem %s1092_s0, %s810_s26  ;;  %p870_p12 = pnand %p869_p11, %p971_p5 }
  0x18   : > { %223 = vmatpush.bf16.msra.mxu0 %v797_v1  ;;  %v790_v2 = vld [vmem:[%s992_s29 + $0x10] sm:$0xff]  ;;  %v791_v3 = vld [vmem:[%s992_s29 + $0x18] sm:$0xff]  ;;  %v792_v14 = vld [vmem:[%s992_s29 + $0x20] sm:$0xff]  ;;  %303 = vmatpush.bf16.msra.mxu2 %v799_v17  ;;  %p875_p2 = por %p874_p1, %p873_p0 }
  0x19   : > { %v793_v15 = vld [vmem:[%s992_s29 + $0x28] sm:$0xff]  ;;  %v794_v59 = vld [vmem:[%s992_s29 + $0x30] sm:$0xff]  ;;  %v795_v60 = vld [vmem:[%s992_s29 + $0x38] sm:$0xff]  ;;  %p871_p13 = pneg %p870_p12 }
  0x1a   : > { %v788_v62 = vld [vmem:[%s992_s29] sm:$0xff]  ;;  %v789_v1 = vld [vmem:[%s992_s29 + $0x8] sm:$0xff] }
  0x1b   : > { %696 = vmatmul.msk.bf16.vlgmr.msra.gmra.mxu0 %vm209_vm0, %v790_v2  ;;  %p876_p3 = pnand %p875_p2, %p871_p13 }
  0x1c   : > { %358 = vmatpush.bf16.msrb.mxu0 %v800_v16  ;;  %442 = vmatpush.bf16.msrb.mxu2 %v804_v63 }
  0x20   : > { %359 = vmatpush.bf16.msrb.mxu0 %v799_v17  ;;  %443 = vmatpush.bf16.msrb.mxu2 %v803_v0 }
  0x2b   : > { %697 = vmatmul.msk.bf16.gmra.mxu0 %vm209_vm0, %v791_v3 }
  0x98   : > { %v998_v4 = vpop.f32.mrf.mxu0 }
  0x99   : > { %v235_v12 = vmax.f32 %v998_v4, 0.0 }
  0xa0   : > { %v227_v5 = vpop.f32.mrf.mxu0 }
  0xa1   : > { %v236_v11 = vmax.f32 %v227_v5, 0.0 }
  0xa3   : > { %v239_v13 = vpack.c.bf16 %v236_v11, %v235_v12 }
  0xa8   : > { %v230_v6 = vpop.f32.mrf.mxu0 }
  0xa9   : > { %v237_v8 = vmax.f32 %v230_v6, 0.0 }
  0xb0   : > { %v232_v7 = vpop.f32.mrf.mxu0 }
  0xb1   : > { %v238_v9 = vmax.f32 %v232_v7, 0.0 }
  0xb3   : > { %v240_v10 = vpack.c.bf16 %v238_v9, %v237_v8 }
  0xb5   : > { %263 = vmatpush.bf16.msra.mxu1 %v240_v10 }
  0xb9   : > { %264 = vmatpush.bf16.msra.mxu1 %v239_v13 }
  0xbc   : > { %706 = vmatmul.msk.bf16.vlgmr.msra.gmra.mxu1 %vm209_vm0, %v792_v14 }
  0xcc   : > { %707 = vmatmul.msk.bf16.gmra.mxu1 %vm209_vm0, %v793_v15 }
 0x139   : > { %v266_v18 = vpop.f32.mrf.mxu1 }
 0x141   : > { %v268_v19 = vpop.f32.mrf.mxu1 }
 0x142   : > { %v276_v20 = vpack.c.bf16 %v268_v19, %v266_v18 }
 0x144   : > { %716 = vmatmul.msk.bf16.vlgmr.msra.gmra.mxu2 %vm209_vm0, %v276_v20 }
 0x149   : > { %v271_v21 = vpop.f32.mrf.mxu1 }
 0x151   : > { %v273_v22 = vpop.f32.mrf.mxu1 }
 0x152   : > { %v277_v23 = vpack.c.bf16 %v273_v22, %v271_v21 }
 0x154   : > { %717 = vmatmul.msk.bf16.gmra.mxu2 %vm209_vm0, %v277_v23 }
 0x1c7   : > { %v305_v24 = vpop.f32.mrf.mxu2 }
 0x1c8   : > { %v315_v31 = vadd.f32 %v305_v24, %v998_v4 }
 0x1ca   : > { %v319_v36 = vmax.f32 %v315_v31, 0.0 }
 0x1cf   : > { %v307_v25 = vpop.f32.mrf.mxu2 }
 0x1d0   : > { %v316_v29 = vadd.f32 %v307_v25, %v227_v5 }
 0x1d2   : > { %v320_v34 = vmax.f32 %v316_v29, 0.0 }
 0x1d4   : > { %v323_v37 = vpack.c.bf16 %v320_v34, %v319_v36  ;;  %v185_v34 = vld [vmem:[%s1093_s1 + $0x60] sm:$0x1] }
 0x1d7   : > { %v310_v26 = vpop.f32.mrf.mxu2 }
 0x1d8   : > { %v317_v27 = vadd.f32 %v310_v26, %v230_v6  ;;  %v796_v26 = vld [vmem:[%s992_s29 + $0x40] sm:$0xff] }
 0x1da   : > { %v321_v32 = vmax.f32 %v317_v27, 0.0  ;;  %v806_v27 = vld [vmem:[%s1093_s1 + $0x48] sm:$0xff] }
 0x1df   : > { %v312_v28 = vpop.f32.mrf.mxu2 }
 0x1e0   : > { %v318_v30 = vadd.f32 %v312_v28, %v232_v7  ;;  %v805_v28 = vld [vmem:[%s1093_s1 + $0x40] sm:$0xff] }
 0x1e2   : > { %v322_v33 = vmax.f32 %v318_v30, 0.0 }
 0x1e4   : > { %v324_v35 = vpack.c.bf16 %v322_v33, %v321_v32  ;;  %v808_v32 = vld [vmem:[%s1093_s1 + $0x58] sm:$0xff]  ;;  %v807_v33 = vld [vmem:[%s1093_s1 + $0x50] sm:$0xff] }
 0x1e5   : > { %586 = vmatpush.bf16.msra.mxu2 %v808_v32 }
 0x1e6   : > { %331 = vmatpush.bf16.msra.mxu3 %v324_v35  ;;  %v186_v35 = vunpack.c.l.bf16 %v185_v34 }
 0x1e9   : > { %587 = vmatpush.bf16.msra.mxu2 %v807_v33 }
 0x1ea   : > { %332 = vmatpush.bf16.msra.mxu3 %v323_v37  ;;  %v531_v37 = vperm.slane %v186_v35, 0 }
 0x1ed   : > { %718 = vmatmul.msk.bf16.vlgmr.msra.gmra.mxu3 %vm209_vm0, %v792_v14 }
 0x1ee   : > { %489 = vmatpush.bf16.msrb.mxu3 %v802_v47 }
 0x1f2   : > { %490 = vmatpush.bf16.msrb.mxu3 %v801_v61 }
 0x1fd   : > { %719 = vmatmul.msk.bf16.gmra.mxu3 %vm209_vm0, %v793_v15 }
 0x20d   : > { %758 = vmatmul.msk.bf16.vlgmr.msrb.gmra.mxu3 %vm209_vm0, %v788_v62 }
 0x21d   : > { %759 = vmatmul.msk.bf16.gmra.mxu3 %vm209_vm0, %v789_v1 }
 0x270   : > { %v334_v38 = vpop.f32.mrf.mxu3 }
 0x278   : > { %v336_v39 = vpop.f32.mrf.mxu3 }
 0x279   : > { %v344_v40 = vpack.c.bf16 %v336_v39, %v334_v38 }
 0x27b   : > { %720 = vmatmul.msk.bf16.vlgmr.msrb.gmra.mxu0 %vm209_vm0, %v344_v40 }
 0x280   : > { %v339_v41 = vpop.f32.mrf.mxu3 }
 0x288   : > { %v341_v42 = vpop.f32.mrf.mxu3 }
 0x289   : > { %v345_v43 = vpack.c.bf16 %v341_v42, %v339_v41 }
 0x28b   : > { %721 = vmatmul.msk.bf16.gmra.mxu0 %vm209_vm0, %v345_v43 }
 0x290   : > { %v492_v8 = vpop.f32.mrf.mxu3 }
 0x298   : > { %v494_v10 = vpop.f32.mrf.mxu3 }
 0x2a0   : > { %v497_v12 = vpop.f32.mrf.mxu3 }
 0x2a8   : > { %v499_v15 = vpop.f32.mrf.mxu3 }
 0x2f8   : > { %v361_v44 = vpop.f32.mrf.mxu0 }
 0x2f9   : > { %v371_v52 = vadd.f32 %v361_v44, %v998_v4  ;;  %v564_v44 = vperm.slane %v186_v35, 1 }
 0x2fb   : > { %v375_v57 = vmax.f32 %v371_v52, 0.0 }
 0x300   : > { %v363_v45 = vpop.f32.mrf.mxu0 }
 0x301   : > { %v372_v50 = vadd.f32 %v363_v45, %v227_v5 }
 0x303   : > { %v376_v55 = vmax.f32 %v372_v50, 0.0 }
 0x305   : > { %v379_v58 = vpack.c.bf16 %v376_v55, %v375_v57 }
 0x308   : > { %v366_v46 = vpop.f32.mrf.mxu0 }
 0x309   : > { %v373_v48 = vadd.f32 %v366_v46, %v230_v6 }
 0x30b   : > { %v377_v53 = vmax.f32 %v373_v48, 0.0 }
 0x310   : > { %v368_v49 = vpop.f32.mrf.mxu0 }
 0x311   : > { %v374_v51 = vadd.f32 %v368_v49, %v232_v7 }
 0x313   : > { %v378_v54 = vmax.f32 %v374_v51, 0.0 }
 0x315   : > { %v380_v56 = vpack.c.bf16 %v378_v54, %v377_v53 }
 0x317   : > { %403 = vmatpush.bf16.msrb.mxu1 %v380_v56 }
 0x31b   : > { %404 = vmatpush.bf16.msrb.mxu1 %v379_v58 }
 0x31e   : > { %730 = vmatmul.msk.bf16.vlgmr.msrb.gmra.mxu1 %vm209_vm0, %v794_v59 }
 0x31f   : > { %553 = vmatpush.bf16.msra.mxu1 %v806_v27 }
 0x323   : > { %554 = vmatpush.bf16.msra.mxu1 %v805_v28 }
 0x32e   : > { %731 = vmatmul.msk.bf16.gmra.mxu1 %vm209_vm0, %v795_v60 }
 0x39b   : > { %v406_v2 = vpop.f32.mrf.mxu1 }
 0x3a3   : > { %v408_v3 = vpop.f32.mrf.mxu1 }
 0x3a4   : > { %v416_v4 = vpack.c.bf16 %v408_v3, %v406_v2 }
 0x3a6   : > { %740 = vmatmul.msk.bf16.vlgmr.msrb.gmra.mxu2 %vm209_vm0, %v416_v4 }
 0x3ab   : > { %v411_v5 = vpop.f32.mrf.mxu1 }
 0x3b3   : > { %v413_v6 = vpop.f32.mrf.mxu1 }
 0x3b4   : > { %v417_v7 = vpack.c.bf16 %v413_v6, %v411_v5 }
 0x3b6   : > { %741 = vmatmul.msk.bf16.gmra.mxu2 %vm209_vm0, %v417_v7 }
 0x429   : > { %v445_v9 = vpop.f32.mrf.mxu2 }
 0x42a   : > { %v493_v19 = vadd.f32 %v492_v8, %v445_v9 }
 0x42c   : > { %v502_v24 = vmax.f32 %v493_v19, 0.0 }
 0x431   : > { %v447_v11 = vpop.f32.mrf.mxu2 }
 0x432   : > { %v495_v17 = vadd.f32 %v494_v10, %v447_v11 }
 0x434   : > { %v503_v22 = vmax.f32 %v495_v17, 0.0 }
 0x436   : > { %v506_v25 = vpack.c.bf16 %v503_v22, %v502_v24 }
 0x439   : > { %v450_v13 = vpop.f32.mrf.mxu2 }
 0x43a   : > { %v498_v14 = vadd.f32 %v497_v12, %v450_v13 }
 0x43c   : > { %v504_v20 = vmax.f32 %v498_v14, 0.0 }
 0x441   : > { %v452_v16 = vpop.f32.mrf.mxu2 }
 0x442   : > { %v500_v18 = vadd.f32 %v499_v15, %v452_v16 }
 0x444   : > { %v505_v21 = vmax.f32 %v500_v18, 0.0 }
 0x446   : > { %v507_v23 = vpack.c.bf16 %v505_v21, %v504_v20 }
 0x448   : > { %522 = vmatpush.bf16.msra.mxu0 %v507_v23 }
 0x44c   : > { %523 = vmatpush.bf16.msra.mxu0 %v506_v25 }
 0x44f   : > { %764 = vmatmul.msk.bf16.vlgmr.msra.gmra.mxu0 %vm209_vm0, %v796_v26 }
 0x4cc   : > { %v525_v29 = vpop.f32.mrf.mxu0 }
 0x4d4   : > { %v527_v30 = vpop.f32.mrf.mxu0 }
 0x4d5   : > { %v530_v31 = vpack.c.bf16 %v527_v30, %v525_v29 }
 0x4d7   : > { %773 = vmatmul.msk.bf16.vlgmr.msra.gmra.mxu1 %vm209_vm0, %v530_v31 }
 0x554   : > { %v556_v36 = vpop.f32.mrf.mxu1 }
 0x555   : > { %v557_v38 = vadd.f32 %v556_v36, %v531_v37 }
 0x557   : > { %v561_v41 = vmax.f32 %v557_v38, 0.0 }
 0x55c   : > { %v558_v39 = vpop.f32.mrf.mxu1 }
 0x55d   : > { %v559_v40 = vadd.f32 %v558_v39, %v531_v37 }
 0x55f   : > { %v562_v42 = vmax.f32 %v559_v40, 0.0 }
 0x561   : > { %v563_v43 = vpack.c.bf16 %v562_v42, %v561_v41 }
 0x563   : > { %782 = vmatmul.msk.bf16.vlgmr.msra.gmra.mxu2 %vm209_vm0, %v563_v43 }
 0x5e6   : > { %v589_v45 = vpop.f32.mrf.mxu2 }
 0x5e7   : > { %v590_v46 = vadd.f32 %v589_v45, %v564_v44 }
 0x5e9   : > { %594 = vst [vmem:[%s136_s17] sm:$0xff] %v590_v46 }
 0x5ee   : > { %v591_v47 = vpop.f32.mrf.mxu2 }
 0x5ef   : > { %v592_v48 = vadd.f32 %v591_v47, %v564_v44 }
 0x5f1   : > { %595 = vst [vmem:[%s136_s17 + $0x8] sm:$0xff] %v592_v48 }
 0x5f2   : > { %879 = shalt.err (!%p876_p3)
}
 0x5f3   : > { %s916_s30 = smov 128   ;;  %s917_s3 = smov 8  }
 0x5f4   : > { %811 = dma.vmem_to_hbm [thread:$0]  (%p971_p5), %s610_s21, 256, %s612_s22, %s597_s23, %s916_s30, %s916_s30, %s917_s3  }
 0x5f5 PF: > { %p817_p4 = scmp.ge.s32.totalorder %s914_s12, 2  ;;  %s626_s4 = sand.u32 1, %s902_s9  }
 0x5f6   : > { %s627_s5 = scalar_lea.sflag [#allocation3], %s626_s4 }
 0x5f7   : > { %p814_p7 = pnand %p817_p4, %p975_p6 }
 0x5f9   : > { %p815_p8 = pneg %p814_p7 }
 0x5fb   : > { %897 = dma.done.wait (%p815_p8), %s627_s5, 256  }
 0x5fc   : > { %899 = vsyncadd (%p815_p8), %s627_s5, 4294967040  ;;  %p12_p9 = scmp.ge.s32.totalorder %s958_s15, 6   ;;  %s1097_s9 = smov %s906_s10 }
 0x5fd   : > { %s1098_s10 = smov %s910_s11  ;;  %s1099_s11 = smov %s969_s18 }
 0x5fe   : > { %s1100_s12 = smov %s958_s15  ;;  %14 = sbr.rel (!%p12_p9) target bundleno = 3 (0x3), region = 63 }
 0x603   :  { %633 = vsyncpa [#allocation3], 1 }
 0x604   :  { %635 = vsyncpa [#allocation3 + $0x1], 1 }

</bundles_post_ra>
